<compile_context>
chip_gen: v7x
topology: tpu7x:2x2x1
jax: 0.10.0
libtpu: 0.0.40
codegen_flags: <defaults>
</compile_context>

<pallas_src>
import jax
import jax.numpy as jnp
from jax.experimental import pallas as pl
from jax.experimental.pallas import tpu as pltpu


def ca_block_kernel(x_ref, w1_ref, wh_ref, ww_ref, ah_ref, aw_ref,
                    eh_ref, ew_ref, o_ref):
    # x_ref block: (Nb, C, H*W), lane-dense. Weight/constant refs are full arrays.
    nb = x_ref.shape[0]
    h = ah_ref.shape[1]
    w = aw_ref.shape[1]

    w1 = w1_ref[...]          # (Cr, C)
    wh = wh_ref[...]          # (C, Cr)
    ww = ww_ref[...]          # (C, Cr)
    a_h = ah_ref[...]         # (H*W, H): 0/1, sums over W for each row h
    a_w = aw_ref[...]         # (H*W, W): 0/1, sums over H for each col w
    e_h = eh_ref[...]         # (H, H*W): broadcasts s_h over W in flat layout
    e_w = ew_ref[...]         # (W, H*W): tiles s_w over H in flat layout
    inv_w = 1.0 / w
    inv_h = 1.0 / h

    for i in range(nb):       # static unroll; Nb is small
        xf = x_ref[i].astype(jnp.float32)                                       # (C, H*W)

        # AdaptiveAvgPool2d((h,1)) / ((1,w)) as MXU matmuls (keeps XLU idle).
        pool_h = jnp.dot(xf, a_h, preferred_element_type=jnp.float32) * inv_w   # (C, H)
        pool_w = jnp.dot(xf, a_w, preferred_element_type=jnp.float32) * inv_h   # (C, W)

        # conv_1x1 (C -> Cr) + ReLU, applied to both halves (concat/split removed;
        # identical result since the 1x1 conv is linear and pointwise in space).
        y_h = jnp.maximum(
            jnp.dot(w1, pool_h, preferred_element_type=jnp.float32), 0.0)       # (Cr, H)
        y_w = jnp.maximum(
            jnp.dot(w1, pool_w, preferred_element_type=jnp.float32), 0.0)       # (Cr, W)

        # F_h / F_w (Cr -> C) + sigmoid.
        s_h = jax.nn.sigmoid(
            jnp.dot(wh, y_h, preferred_element_type=jnp.float32))               # (C, H)
        s_w = jax.nn.sigmoid(
            jnp.dot(ww, y_w, preferred_element_type=jnp.float32))               # (C, W)

        # Expand the gates to the flat (C, H*W) layout on the MXU (no reshapes).
        g_h = jnp.dot(s_h, e_h, preferred_element_type=jnp.float32)             # (C, H*W)
        g_w = jnp.dot(s_w, e_w, preferred_element_type=jnp.float32)             # (C, H*W)

        # out = x * s_h (broadcast over W) * s_w (broadcast over H), lane-dense store.
        o_ref[i] = (xf * g_h * g_w).astype(o_ref.dtype)


def _pool_expand_mats(h, w, dtype=jnp.float32):
    """0/1 averaging matrices for the flat (C, H*W) layout and their transposes."""
    idx = jnp.arange(h * w)
    row = idx // w
    col = idx % w
    a_h = (row[:, None] == jnp.arange(h)[None, :]).astype(dtype)   # (H*W, H)
    a_w = (col[:, None] == jnp.arange(w)[None, :]).astype(dtype)   # (H*W, W)
    return a_h, a_w


def _choose_batch_block(n, sample_bytes, target_bytes=2 << 20):
    """Largest divisor of n whose block fits the target, preferring >=2 grid steps."""
    divisors = [d for d in range(1, n + 1) if n % d == 0]
    fits = [d for d in divisors if d * sample_bytes <= target_bytes] or [1]
    pref = [d for d in fits if n // d >= 2]   # keep >=2 steps for v7x dual-TC
    return max(pref) if pref else max(fits)


def ca_block(x, w1, wh, ww, *, target_block_bytes=2 << 20):
    N, C, H, W = x.shape
    Cr = w1.shape[0]
    HW = H * W

    # Lane-dense flat view (free, contiguous reshape done in the wrapper).
    x_flat = x.reshape(N, C, HW)

    a_h, a_w = _pool_expand_mats(H, W, jnp.float32)
    e_h = a_h.T    # (H, H*W)
    e_w = a_w.T    # (W, H*W)

    sample_bytes = C * HW * x.dtype.itemsize
    nb = _choose_batch_block(N, sample_bytes, target_block_bytes)
    grid = (N // nb,)

    out_flat = pl.pallas_call(
        ca_block_kernel,
        out_shape=jax.ShapeDtypeStruct((N, C, HW), x.dtype),
        grid_spec=pltpu.PrefetchScalarGridSpec(
            num_scalar_prefetch=0,
            grid=grid,
            in_specs=[
                pl.BlockSpec((nb, C, HW), lambda n: (n, 0, 0)),
                pl.BlockSpec((Cr, C), lambda n: (0, 0)),
                pl.BlockSpec((C, Cr), lambda n: (0, 0)),
                pl.BlockSpec((C, Cr), lambda n: (0, 0)),
                pl.BlockSpec((HW, H), lambda n: (0, 0)),
                pl.BlockSpec((HW, W), lambda n: (0, 0)),
                pl.BlockSpec((H, HW), lambda n: (0, 0)),
                pl.BlockSpec((W, HW), lambda n: (0, 0)),
            ],
            out_specs=pl.BlockSpec((nb, C, HW), lambda n: (n, 0, 0)),
        ),
        compiler_params=pltpu.CompilerParams(
            dimension_semantics=("parallel",),
            vmem_limit_bytes=32 << 20,
        ),
    )(x_flat, w1, wh, ww, a_h, a_w, e_h, e_w)

    return out_flat.reshape(N, C, H, W)


def ca_block_ref(x, w1, wh, ww):
    """Pure-JAX reference mirroring the PyTorch forward."""
    H = x.shape[2]
    pool_h = jnp.mean(x, axis=3)                       # (N, C, H)
    pool_w = jnp.mean(x, axis=2)                       # (N, C, W)
    cat = jnp.concatenate([pool_h, pool_w], axis=2)    # (N, C, H+W)
    y = jax.nn.relu(jnp.einsum('rc,nct->nrt', w1, cat))
    y_h, y_w = y[:, :, :H], y[:, :, H:]
    s_h = jax.nn.sigmoid(jnp.einsum('cr,nrh->nch', wh, y_h))
    s_w = jax.nn.sigmoid(jnp.einsum('cr,nrw->ncw', ww, y_w))
    return x * s_h[:, :, :, None] * s_w[:, :, None, :]


if __name__ == "__main__":
    # Small shapes consistent with the module (channel must be >= reduction).
    N, C, H, W = 2, 32, 16, 16
    reduction = 16
    Cr = C // reduction                                # 2

    key = jax.random.PRNGKey(0)
    kx, k1, k2, k3 = jax.random.split(key, 4)

    x = jax.random.normal(kx, (N, C, H, W), dtype=jnp.float32)
    # 1x1 conv weights (kernel-size-1 dims dropped): (out_ch, in_ch)
    w1 = jax.random.normal(k1, (Cr, C), dtype=jnp.float32) * (1.0 / jnp.sqrt(C))
    wh = jax.random.normal(k2, (C, Cr), dtype=jnp.float32) * (1.0 / jnp.sqrt(Cr))
    ww = jax.random.normal(k3, (C, Cr), dtype=jnp.float32) * (1.0 / jnp.sqrt(Cr))

    out = jax.block_until_ready(ca_block(x, w1, wh, ww))
    ref = jax.block_until_ready(ca_block_ref(x, w1, wh, ww))

    assert out.shape == x.shape and out.dtype == x.dtype
    max_err = jnp.max(jnp.abs(out - ref))
    assert jnp.allclose(out, ref, atol=1e-4, rtol=1e-4), f"max abs err = {max_err}"
    print("KERNEL_OK")
</pallas_src>

<mosaic_0001>
module attributes {stable_mosaic.version = 11 : i64} {
  func.func @ca_block_kernel(%arg0: i32, %arg1: memref<1x32x256xf32, #tpu.memory_space<vmem>>, %arg2: memref<2x32xf32, #tpu.memory_space<vmem>>, %arg3: memref<32x2xf32, #tpu.memory_space<vmem>>, %arg4: memref<32x2xf32, #tpu.memory_space<vmem>>, %arg5: memref<256x16xf32, #tpu.memory_space<vmem>>, %arg6: memref<256x16xf32, #tpu.memory_space<vmem>>, %arg7: memref<16x256xf32, #tpu.memory_space<vmem>>, %arg8: memref<16x256xf32, #tpu.memory_space<vmem>>, %arg9: memref<1x32x256xf32, #tpu.memory_space<vmem>>) attributes {dimension_semantics = [#tpu.dimension_semantics<parallel>], iteration_bounds = array<i64: 2>, scalar_prefetch = 0 : i64, scratch_operands = 0 : i64, tpu.core_type = #tpu.core_type<tc>, window_params = [{transform_indices = @transform_0, window_bounds = array<i64: 1, 32, 256>}, {pipeline_mode = #tpu.pipeline_mode<synchronous>, transform_indices = @transform_1, window_bounds = array<i64: 2, 32>}, {pipeline_mode = #tpu.pipeline_mode<synchronous>, transform_indices = @transform_2, window_bounds = array<i64: 32, 2>}, {pipeline_mode = #tpu.pipeline_mode<synchronous>, transform_indices = @transform_3, window_bounds = array<i64: 32, 2>}, {pipeline_mode = #tpu.pipeline_mode<synchronous>, transform_indices = @transform_4, window_bounds = array<i64: 256, 16>}, {pipeline_mode = #tpu.pipeline_mode<synchronous>, transform_indices = @transform_5, window_bounds = array<i64: 256, 16>}, {pipeline_mode = #tpu.pipeline_mode<synchronous>, transform_indices = @transform_6, window_bounds = array<i64: 16, 256>}, {pipeline_mode = #tpu.pipeline_mode<synchronous>, transform_indices = @transform_7, window_bounds = array<i64: 16, 256>}, {transform_indices = @transform_8, window_bounds = array<i64: 1, 32, 256>}]} {
    %c0 = arith.constant 0 : index
    %c0_0 = arith.constant 0 : index
    %0 = vector.load %arg2[%c0, %c0_0] : memref<2x32xf32, #tpu.memory_space<vmem>>, vector<2x32xf32>
    %c0_1 = arith.constant 0 : index
    %c0_2 = arith.constant 0 : index
    %1 = vector.load %arg3[%c0_1, %c0_2] : memref<32x2xf32, #tpu.memory_space<vmem>>, vector<32x2xf32>
    %c0_3 = arith.constant 0 : index
    %c0_4 = arith.constant 0 : index
    %2 = vector.load %arg4[%c0_3, %c0_4] : memref<32x2xf32, #tpu.memory_space<vmem>>, vector<32x2xf32>
    %c0_5 = arith.constant 0 : index
    %c0_6 = arith.constant 0 : index
    %3 = vector.load %arg5[%c0_5, %c0_6] : memref<256x16xf32, #tpu.memory_space<vmem>>, vector<256x16xf32>
    %c0_7 = arith.constant 0 : index
    %c0_8 = arith.constant 0 : index
    %4 = vector.load %arg6[%c0_7, %c0_8] : memref<256x16xf32, #tpu.memory_space<vmem>>, vector<256x16xf32>
    %c0_9 = arith.constant 0 : index
    %c0_10 = arith.constant 0 : index
    %5 = vector.load %arg7[%c0_9, %c0_10] : memref<16x256xf32, #tpu.memory_space<vmem>>, vector<16x256xf32>
    %c0_11 = arith.constant 0 : index
    %c0_12 = arith.constant 0 : index
    %6 = vector.load %arg8[%c0_11, %c0_12] : memref<16x256xf32, #tpu.memory_space<vmem>>, vector<16x256xf32>
    %c0_13 = arith.constant 0 : index
    %c0_14 = arith.constant 0 : index
    %c0_15 = arith.constant 0 : index
    %7 = vector.load %arg1[%c0_13, %c0_14, %c0_15] : memref<1x32x256xf32, #tpu.memory_space<vmem>>, vector<1x32x256xf32>
    %8 = vector.shape_cast %7 : vector<1x32x256xf32> to vector<32x256xf32>
    %cst = arith.constant dense<0.000000e+00> : vector<32x16xf32>
    %9 = tpu.matmul %8, %3, %cst {dimension_numbers = #tpu.dot_dimension_numbers<[1], [0], [0], [1], [0, 0, 1, 1], [], []>} : vector<32x256xf32>, vector<256x16xf32>, vector<32x16xf32> -> vector<32x16xf32>
    %cst_16 = arith.constant 6.250000e-02 : f32
    %10 = vector.broadcast %cst_16 : f32 to vector<32x16xf32>
    %11 = arith.mulf %9, %10 : vector<32x16xf32>
    %cst_17 = arith.constant dense<0.000000e+00> : vector<32x16xf32>
    %12 = tpu.matmul %8, %4, %cst_17 {dimension_numbers = #tpu.dot_dimension_numbers<[1], [0], [0], [1], [0, 0, 1, 1], [], []>} : vector<32x256xf32>, vector<256x16xf32>, vector<32x16xf32> -> vector<32x16xf32>
    %cst_18 = arith.constant 6.250000e-02 : f32
    %13 = vector.broadcast %cst_18 : f32 to vector<32x16xf32>
    %14 = arith.mulf %12, %13 : vector<32x16xf32>
    %cst_19 = arith.constant dense<0.000000e+00> : vector<2x16xf32>
    %15 = tpu.matmul %0, %11, %cst_19 {dimension_numbers = #tpu.dot_dimension_numbers<[1], [0], [0], [1], [0, 0, 1, 1], [], []>} : vector<2x32xf32>, vector<32x16xf32>, vector<2x16xf32> -> vector<2x16xf32>
    %cst_20 = arith.constant 0.000000e+00 : f32
    %16 = vector.broadcast %cst_20 : f32 to vector<2x16xf32>
    %17 = arith.maximumf %15, %16 : vector<2x16xf32>
    %cst_21 = arith.constant dense<0.000000e+00> : vector<2x16xf32>
    %18 = tpu.matmul %0, %14, %cst_21 {dimension_numbers = #tpu.dot_dimension_numbers<[1], [0], [0], [1], [0, 0, 1, 1], [], []>} : vector<2x32xf32>, vector<32x16xf32>, vector<2x16xf32> -> vector<2x16xf32>
    %cst_22 = arith.constant 0.000000e+00 : f32
    %19 = vector.broadcast %cst_22 : f32 to vector<2x16xf32>
    %20 = arith.maximumf %18, %19 : vector<2x16xf32>
    %cst_23 = arith.constant dense<0.000000e+00> : vector<32x16xf32>
    %21 = tpu.matmul %1, %17, %cst_23 {dimension_numbers = #tpu.dot_dimension_numbers<[1], [0], [0], [1], [0, 0, 1, 1], [], []>} : vector<32x2xf32>, vector<2x16xf32>, vector<32x16xf32> -> vector<32x16xf32>
    %22 = arith.negf %21 : vector<32x16xf32>
    %23 = math.exp %22 : vector<32x16xf32>
    %cst_24 = arith.constant 1.000000e+00 : f32
    %24 = vector.broadcast %cst_24 : f32 to vector<32x16xf32>
    %25 = arith.addf %24, %23 : vector<32x16xf32>
    %26 = arith.divf %24, %25 : vector<32x16xf32>
    %cst_25 = arith.constant dense<0.000000e+00> : vector<32x16xf32>
    %27 = tpu.matmul %2, %20, %cst_25 {dimension_numbers = #tpu.dot_dimension_numbers<[1], [0], [0], [1], [0, 0, 1, 1], [], []>} : vector<32x2xf32>, vector<2x16xf32>, vector<32x16xf32> -> vector<32x16xf32>
    %28 = arith.negf %27 : vector<32x16xf32>
    %29 = math.exp %28 : vector<32x16xf32>
    %cst_26 = arith.constant 1.000000e+00 : f32
    %30 = vector.broadcast %cst_26 : f32 to vector<32x16xf32>
    %31 = arith.addf %30, %29 : vector<32x16xf32>
    %32 = arith.divf %30, %31 : vector<32x16xf32>
    %cst_27 = arith.constant dense<0.000000e+00> : vector<32x256xf32>
    %33 = tpu.matmul %26, %5, %cst_27 {dimension_numbers = #tpu.dot_dimension_numbers<[1], [0], [0], [1], [0, 0, 1, 1], [], []>} : vector<32x16xf32>, vector<16x256xf32>, vector<32x256xf32> -> vector<32x256xf32>
    %cst_28 = arith.constant dense<0.000000e+00> : vector<32x256xf32>
    %34 = tpu.matmul %32, %6, %cst_28 {dimension_numbers = #tpu.dot_dimension_numbers<[1], [0], [0], [1], [0, 0, 1, 1], [], []>} : vector<32x16xf32>, vector<16x256xf32>, vector<32x256xf32> -> vector<32x256xf32>
    %35 = arith.mulf %8, %33 : vector<32x256xf32>
    %36 = arith.mulf %35, %34 : vector<32x256xf32>
    %c0_29 = arith.constant 0 : index
    %c0_30 = arith.constant 0 : index
    %c0_31 = arith.constant 0 : index
    %37 = vector.load %arg9[%c0_29, %c0_30, %c0_31] : memref<1x32x256xf32, #tpu.memory_space<vmem>>, vector<1x32x256xf32>
    %38 = vector.shape_cast %37 : vector<1x32x256xf32> to vector<32x256xf32>
    %39 = vector.shape_cast %36 : vector<32x256xf32> to vector<1x32x256xf32>
    tpu.vector_store %arg9[%c0_29, %c0_30, %c0_31], %39 {strides = array<i32>} : memref<1x32x256xf32, #tpu.memory_space<vmem>>, vector<1x32x256xf32>,
    return
  }
  func.func @transform_0(%arg0: i32) -> (i32, i32, i32) {
    %c0_i32 = arith.constant 0 : i32
    %c0_i32_0 = arith.constant 0 : i32
    %c0_i32_1 = arith.constant 0 : i32
    return %arg0, %c0_i32, %c0_i32_0 : i32, i32, i32
  }
  func.func @transform_1(%arg0: i32) -> (i32, i32) {
    %c0_i32 = arith.constant 0 : i32
    %c0_i32_0 = arith.constant 0 : i32
    %c0_i32_1 = arith.constant 0 : i32
    return %c0_i32, %c0_i32_0 : i32, i32
  }
  func.func @transform_2(%arg0: i32) -> (i32, i32) {
    %c0_i32 = arith.constant 0 : i32
    %c0_i32_0 = arith.constant 0 : i32
    %c0_i32_1 = arith.constant 0 : i32
    return %c0_i32, %c0_i32_0 : i32, i32
  }
  func.func @transform_3(%arg0: i32) -> (i32, i32) {
    %c0_i32 = arith.constant 0 : i32
    %c0_i32_0 = arith.constant 0 : i32
    %c0_i32_1 = arith.constant 0 : i32
    return %c0_i32, %c0_i32_0 : i32, i32
  }
  func.func @transform_4(%arg0: i32) -> (i32, i32) {
    %c0_i32 = arith.constant 0 : i32
    %c0_i32_0 = arith.constant 0 : i32
    %c0_i32_1 = arith.constant 0 : i32
    return %c0_i32, %c0_i32_0 : i32, i32
  }
  func.func @transform_5(%arg0: i32) -> (i32, i32) {
    %c0_i32 = arith.constant 0 : i32
    %c0_i32_0 = arith.constant 0 : i32
    %c0_i32_1 = arith.constant 0 : i32
    return %c0_i32, %c0_i32_0 : i32, i32
  }
  func.func @transform_6(%arg0: i32) -> (i32, i32) {
    %c0_i32 = arith.constant 0 : i32
    %c0_i32_0 = arith.constant 0 : i32
    %c0_i32_1 = arith.constant 0 : i32
    return %c0_i32, %c0_i32_0 : i32, i32
  }
  func.func @transform_7(%arg0: i32) -> (i32, i32) {
    %c0_i32 = arith.constant 0 : i32
    %c0_i32_0 = arith.constant 0 : i32
    %c0_i32_1 = arith.constant 0 : i32
    return %c0_i32, %c0_i32_0 : i32, i32
  }
  func.func @transform_8(%arg0: i32) -> (i32, i32, i32) {
    %c0_i32 = arith.constant 0 : i32
    %c0_i32_0 = arith.constant 0 : i32
    %c0_i32_1 = arith.constant 0 : i32
    return %arg0, %c0_i32, %c0_i32_0 : i32, i32, i32
  }
}

</mosaic_0001>

<bundles_post_ra>
// kernel: tpu_custom_call.1
= control target key start
LH: loop header
LB: loop body
LE: loop exit
PB: predicated region body
PF: predicated region fallthrough
CT: control target
= control target key end

     0   :  { %13 = vsyncpa [#allocation3], 0  ;;  %s2175_s0 = inlined_call_operand.vmem [shape: f32[2,32,256], index: 0, kind: input, shape index: {}]   ;;  %s2176_s1 = inlined_call_operand.vmem [shape: f32[2,32], index: 1, kind: input, shape index: {}]   ;;  %s2177_s2 = inlined_call_operand.vmem [shape: f32[32,2], index: 2, kind: input, shape index: {}]   ;;  %s2178_s3 = inlined_call_operand.vmem [shape: f32[32,2], index: 3, kind: input, shape index: {}]   ;;  %s2179_s4 = inlined_call_operand.vmem [shape: f32[256,16], index: 4, kind: input, shape index: {}]   ;;  %s2180_s5 = inlined_call_operand.vmem [shape: f32[256,16], index: 5, kind: input, shape index: {}]   ;;  %s2181_s6 = inlined_call_operand.vmem [shape: f32[16,256], index: 6, kind: input, shape index: {}]   ;;  %s2182_s7 = inlined_call_operand.vmem [shape: f32[16,256], index: 7, kind: input, shape index: {}]   ;;  %s2183_s8 = inlined_call_operand.hbm [shape: f32[2,32,256], index: 8, kind: output, shape index: {}]  }
   0x1   :  { %15 = vsyncpa [#allocation3 + $0x1], 0  ;;  %s1733_s27 = smov 0   ;;  %s1735_s28 = smov 0  }
   0x2   :  { %s1737_s29 = smov 0   ;;  %s1739_s30 = smov 0  }
   0x3 LB: > { %s1754_s9 = sadd.s32 4294967295, %s1680_s30   ;;  %s1270_s10 = sadd.s32 4294967294, %s1680_s30   ;;  %s1680_s30 = sphi %s1739_s30, %s2189_s30   ;;  %s1676_s29 = sphi %s1737_s29, %s2188_s29   ;;  %s1672_s28 = sphi %s1735_s28, %s2187_s28   ;;  %s1668_s27 = sphi %s1733_s27, %s2186_s27  }
   0x4   : > { %s1758_s11 = sadd.s32 1, %s1680_s30   ;;  %s201_s12 = sadd.s32 1, %s1676_s29 }
   0x5   : > { %s198_s13 = ssub.s32 %s1680_s30, %s1758_s11  ;;  %p211_p0 = scmp.ne.s32.totalorder %s1676_s29, %s1672_s28 }
   0x6   : > { %p199_p1 = scmp.eq.s32.totalorder %s198_s13, 0  ;;  %p212_p2 = scmp.eq.s32.totalorder %s1754_s9, 1 }
   0x7   : > { %p217_p3 = scmp.ne.s32.totalorder %s1672_s28, %s1668_s27  ;;  %p218_p4 = scmp.eq.s32.totalorder %s1270_s10, 1 }
   0x8   : > { %s1769_s14 = scalar_select %p199_p1, %s1676_s29, %s201_s12  }
   0x9   : > { %p1771_p5 = por %p212_p2, %p211_p0  ;;  %p1775_p6 = por %p218_p4, %p217_p3 }
   0xa   : > { %p1273_p7 = scmp.ge.s32.totalorder %s1680_s30, 1  ;;  %p265_p8 = scmp.lt.s32.totalorder %s1680_s30, 3 }
   0xc   : > { %p266_p9 = pnand %p1273_p7, %p265_p8 }
   0xd   : > { %v329_v0 = vld [vmem:[%s2179_s4 + $0x80] sm:$0xff] (!%p266_p9)  ;;  %v330_v1 = vld [vmem:[%s2179_s4 + $0x88] sm:$0xff] (!%p266_p9)  ;;  %v331_v11 = vld [vmem:[%s2179_s4 + $0x90] sm:$0xff] (!%p266_p9)  ;;  %p299_p10 = scmp.lt.s32.totalorder (!%p266_p9), %s1754_s9, 1  ;;  %vm1683_vm0 = vmmov (!%p266_p9), 0   ;;  %vm571_vm1 = vcmask (!%p266_p9), 261120  }
   0xe   : > { %269 = sbr.rel (%p266_p9) target bundleno = 982 (0x3d6), region = 52  ;;  %v361_v2 = vld [vmem:[%s2180_s5 + $0x80] sm:$0xff] (!%p266_p9)  ;;  %v1458_v3 = vpack.c.bf16 (!%p266_p9), %v330_v1, %v329_v0  ;;  %v362_v4 = vld [vmem:[%s2180_s5 + $0x88] sm:$0xff] (!%p266_p9)  ;;  %v332_v13 = vld [vmem:[%s2179_s4 + $0x98] sm:$0xff] (!%p266_p9)  ;;  %vm717_vm2 = vcmask (!%p266_p9), 15360   ;;  %vm730_vm3 = vcmask (!%p266_p9), 1041408  }
   0xf   : > { %v313_v5 = vld [vmem:[%s2179_s4] sm:$0xff] (!%p266_p9)  ;;  %v314_v6 = vld [vmem:[%s2179_s4 + $0x8] sm:$0xff] (!%p266_p9)  ;;  %v1490_v7 = vpack.c.bf16 (!%p266_p9), %v362_v4, %v361_v2  ;;  %v363_v14 = vld [vmem:[%s2180_s5 + $0x90] sm:$0xff] (!%p266_p9)  ;;  %v1462_v16 = vpack.c.bf16 (!%p266_p9), %v332_v13, %v331_v11  ;;  %vm967_vm4 = vcmask (!%p266_p9), 130048   ;;  %s296_s18 = sand.u32 (!%p266_p9), 1, %s1672_s28   ;;  %s1311_s22 = sshll.u32 (!%p266_p9), %s1754_s9, 10 }
  0x10   : > { %v1460_v8 = vpack.c.bf16 (!%p266_p9), %v314_v6, %v313_v5  ;;  %v345_v9 = vld [vmem:[%s2180_s5] sm:$0xff] (!%p266_p9)  ;;  %v346_v10 = vld [vmem:[%s2180_s5 + $0x8] sm:$0xff] (!%p266_p9)  ;;  %1459 = vmatprep.subr.bf16.mxu0 (!%p266_p9), %v1458_v3  ;;  %v364_v15 = vld [vmem:[%s2180_s5 + $0x98] sm:$0xff] (!%p266_p9)  ;;  %s1274_s20 = sshll.u32 (!%p266_p9), %s296_s18, 6  ;;  %s2126_s25 = scalar_lea.hbm (!%p266_p9), %s2183_s8, %s1311_s22 }
  0x11   : > { %v1492_v12 = vpack.c.bf16 (!%p266_p9), %v346_v10, %v345_v9  ;;  %1491 = vmatprep.subr.bf16.mxu1 (!%p266_p9), %v1490_v7  ;;  %v1494_v17 = vpack.c.bf16 (!%p266_p9), %v364_v15, %v363_v14  ;;  %v315_v18 = vld [vmem:[%s2179_s4 + $0x10] sm:$0xff] (!%p266_p9)  ;;  %v316_v19 = vld [vmem:[%s2179_s4 + $0x18] sm:$0xff] (!%p266_p9)  ;;  %v333_v23 = vld [vmem:[%s2179_s4 + $0xa0] sm:$0xff] (!%p266_p9)  ;;  %s2107_s21 = scalar_lea.vmem (!%p266_p9), [#allocation2], %s1274_s20  ;;  %s1685_s26 = smov (!%p266_p9), [#allocation2]  }
  0x12   : > { %1461 = vmatpush3.bf16.msra.mxu0 (!%p266_p9), %v1460_v8  ;;  %v347_v20 = vld [vmem:[%s2180_s5 + $0x10] sm:$0xff] (!%p266_p9)  ;;  %v1464_v21 = vpack.c.bf16 (!%p266_p9), %v316_v19, %v315_v18  ;;  %v348_v22 = vld [vmem:[%s2180_s5 + $0x18] sm:$0xff] (!%p266_p9)  ;;  %v334_v24 = vld [vmem:[%s2179_s4 + $0xa8] sm:$0xff] (!%p266_p9)  ;;  %s1622_s10 = sshll.u32 (!%p266_p9), %s1685_s26, 4  ;;  %s1623_s10 = int_to_ptr.vmem [resolvable:$false] %s1622_s10 }
  0x13   : > { %1493 = vmatpush3.bf16.msra.mxu1 (!%p266_p9), %v1492_v12  ;;  %1463 = vmatprep.subr.bf16.mxu0 (!%p266_p9), %v1462_v16  ;;  %v1496_v25 = vpack.c.bf16 (!%p266_p9), %v348_v22, %v347_v20  ;;  %v1466_v26 = vpack.c.bf16 (!%p266_p9), %v334_v24, %v333_v23  ;;  %v365_v27 = vld [vmem:[%s2180_s5 + $0xa0] sm:$0xff] (!%p266_p9)  ;;  %v366_v28 = vld [vmem:[%s2180_s5 + $0xa8] sm:$0xff] (!%p266_p9)  ;;  %v335_v35 = vld [vmem:[%s2179_s4 + $0xb0] sm:$0xff] (!%p266_p9)  ;;  %s1624_s12 = scalar_lea.vmem (!%p266_p9), %s1623_s10, 2048 }
  0x14   : > { %1495 = vmatprep.subr.bf16.mxu1 (!%p266_p9), %v1494_v17  ;;  %v317_v29 = vld [vmem:[%s2179_s4 + $0x20] sm:$0xff] (!%p266_p9)  ;;  %v1498_v30 = vpack.c.bf16 (!%p266_p9), %v366_v28, %v365_v27  ;;  %v318_v31 = vld [vmem:[%s2179_s4 + $0x28] sm:$0xff] (!%p266_p9)  ;;  %v336_v36 = vld [vmem:[%s2179_s4 + $0xb8] sm:$0xff] (!%p266_p9) }
  0x15   : > { %v349_v32 = vld [vmem:[%s2180_s5 + $0x20] sm:$0xff]  ;;  %v350_v33 = vld [vmem:[%s2180_s5 + $0x28] sm:$0xff]  ;;  %v1468_v34 = vpack.c.bf16 %v318_v31, %v317_v29  ;;  %v367_v37 = vld [vmem:[%s2180_s5 + $0xb0] sm:$0xff]  ;;  %v1470_v39 = vpack.c.bf16 %v336_v36, %v335_v35  ;;  %s1893_s24 = scalar_select %p299_p10, %s1754_s9, 1 }
  0x16   : > { %1465 = vmatpush3.bf16.msra.mxu0 %v1464_v21  ;;  %v1500_v38 = vpack.c.bf16 %v350_v33, %v349_v32  ;;  %v368_v40 = vld [vmem:[%s2180_s5 + $0xb8] sm:$0xff]  ;;  %v319_v41 = vld [vmem:[%s2179_s4 + $0x30] sm:$0xff]  ;;  %v337_v46 = vld [vmem:[%s2179_s4 + $0xc0] sm:$0xff]  ;;  %s2134_s9 = scalar_lea.sflag [#allocation3], %s296_s18 }
  0x17   : > { %1497 = vmatpush3.bf16.msra.mxu1 %v1496_v25  ;;  %1467 = vmatprep.subr.bf16.mxu0 %v1466_v26  ;;  %v320_v42 = vld [vmem:[%s2179_s4 + $0x38] sm:$0xff]  ;;  %v1502_v43 = vpack.c.bf16 %v368_v40, %v367_v37  ;;  %v351_v44 = vld [vmem:[%s2180_s5 + $0x30] sm:$0xff]  ;;  %v338_v47 = vld [vmem:[%s2179_s4 + $0xc8] sm:$0xff]  ;;  %s1310_s13 = sshll.u32 %s1893_s24, 6  ;;  %v1682_v40 = vmov 0.0|0.0   ;;  %s1208_s24 = sshll.u32 %s2107_s21, 4  ;;  %s2128_s24 = int_to_ptr.vmem [resolvable:$true] %s1208_s24 }
  0x18   : > { %1499 = vmatprep.subr.bf16.mxu1 %v1498_v30  ;;  %v352_v45 = vld [vmem:[%s2180_s5 + $0x38] sm:$0xff]  ;;  %v369_v48 = vld [vmem:[%s2180_s5 + $0xc0] sm:$0xff]  ;;  %v370_v49 = vld [vmem:[%s2180_s5 + $0xc8] sm:$0xff]  ;;  %v1472_v50 = vpack.c.bf16 %v320_v42, %v319_v41  ;;  %v1474_v52 = vpack.c.bf16 %v338_v47, %v337_v46  ;;  %s1941_s19 = scalar_lea.vmem %s2175_s0, %s1310_s13  ;;  %v1684_v41 = vmov 0.0   ;;  %s1618_s13 = scalar_lea.vmem %s2128_s24, 1024 }
  0x19   : > { %v1504_v51 = vpack.c.bf16 %v352_v45, %v351_v44  ;;  %v321_v53 = vld [vmem:[%s2179_s4 + $0x40] sm:$0xff]  ;;  %v322_v54 = vld [vmem:[%s2179_s4 + $0x48] sm:$0xff]  ;;  %v1506_v56 = vpack.c.bf16 %v370_v49, %v369_v48  ;;  %v339_v58 = vld [vmem:[%s2179_s4 + $0xd0] sm:$0xff]  ;;  %p1619_p11 = scmp.ne.s32.totalorder %s2128_s24, %s1618_s13  ;;  %p1625_p0 = scmp.lt.s32.totalorder %s2128_s24, %s1623_s10 }
  0x1a   : > { %1469 = vmatpush3.bf16.msra.mxu0 %v1468_v34  ;;  %v353_v55 = vld [vmem:[%s2180_s5 + $0x40] sm:$0xff]  ;;  %v354_v57 = vld [vmem:[%s2180_s5 + $0x48] sm:$0xff]  ;;  %v340_v59 = vld [vmem:[%s2179_s4 + $0xd8] sm:$0xff]  ;;  %v1476_v62 = vpack.c.bf16 %v322_v54, %v321_v53  ;;  %p1626_p1 = scmp.lt.s32.totalorder %s1624_s12, %s1618_s13 }
  0x1b   : > { %1501 = vmatpush3.bf16.msra.mxu1 %v1500_v38  ;;  %1471 = vmatprep.subr.bf16.mxu0 %v1470_v39  ;;  %v371_v60 = vld [vmem:[%s2180_s5 + $0xd0] sm:$0xff]  ;;  %v372_v61 = vld [vmem:[%s2180_s5 + $0xd8] sm:$0xff]  ;;  %v1508_v63 = vpack.c.bf16 %v354_v57, %v353_v55  ;;  %v1478_v0 = vpack.c.bf16 %v340_v59, %v339_v58  ;;  %v341_v6 = vld [vmem:[%s2179_s4 + $0xe0] sm:$0xff]  ;;  %p1620_p12 = pnand %p1619_p11, %p1771_p5 }
  0x1c   : > { %1503 = vmatprep.subr.bf16.mxu1 %v1502_v43  ;;  %v323_v1 = vld [vmem:[%s2179_s4 + $0x50] sm:$0xff]  ;;  %v324_v2 = vld [vmem:[%s2179_s4 + $0x58] sm:$0xff]  ;;  %v1510_v4 = vpack.c.bf16 %v372_v61, %v371_v60  ;;  %v342_v7 = vld [vmem:[%s2179_s4 + $0xe8] sm:$0xff]  ;;  %p1627_p2 = por %p1626_p1, %p1625_p0 }
  0x1d   : > { %v355_v3 = vld [vmem:[%s2180_s5 + $0x50] sm:$0xff]  ;;  %v356_v5 = vld [vmem:[%s2180_s5 + $0x58] sm:$0xff]  ;;  %v373_v8 = vld [vmem:[%s2180_s5 + $0xe0] sm:$0xff]  ;;  %v1480_v10 = vpack.c.bf16 %v324_v2, %v323_v1  ;;  %v1482_v13 = vpack.c.bf16 %v342_v7, %v341_v6  ;;  %p1621_p13 = pneg %p1620_p12 }
  0x1e   : > { %1473 = vmatpush3.bf16.msra.mxu0 %v1472_v50  ;;  %v374_v9 = vld [vmem:[%s2180_s5 + $0xe8] sm:$0xff]  ;;  %v325_v11 = vld [vmem:[%s2179_s4 + $0x60] sm:$0xff]  ;;  %v1512_v12 = vpack.c.bf16 %v356_v5, %v355_v3  ;;  %v343_v19 = vld [vmem:[%s2179_s4 + $0xf0] sm:$0xff] }
  0x1f   : > { %1505 = vmatpush3.bf16.msra.mxu1 %v1504_v51  ;;  %1475 = vmatprep.subr.bf16.mxu0 %v1474_v52  ;;  %v326_v14 = vld [vmem:[%s2179_s4 + $0x68] sm:$0xff]  ;;  %v357_v15 = vld [vmem:[%s2180_s5 + $0x60] sm:$0xff]  ;;  %v1514_v17 = vpack.c.bf16 %v374_v9, %v373_v8  ;;  %v344_v20 = vld [vmem:[%s2179_s4 + $0xf8] sm:$0xff]  ;;  %p1628_p3 = pnand %p1627_p2, %p1621_p13 }
  0x20   : > { %1507 = vmatprep.subr.bf16.mxu1 %v1506_v56  ;;  %v1959_v16 = vld [vmem:[%s1941_s19 + $0x8] sm:$0xff]  ;;  %v375_v21 = vld [vmem:[%s2180_s5 + $0xf0] sm:$0xff]  ;;  %v376_v22 = vld [vmem:[%s2180_s5 + $0xf8] sm:$0xff]  ;;  %v1484_v23 = vpack.c.bf16 %v326_v14, %v325_v11  ;;  %v1486_v25 = vpack.c.bf16 %v344_v20, %v343_v19 }
  0x21   : > { %v358_v18 = vld [vmem:[%s2180_s5 + $0x68] sm:$0xff]  ;;  %457 = vmatprep.mubr.f32.mxu0 %v1959_v16  ;;  %546 = vmatprep.mubr.f32.mxu1 %v1959_v16  ;;  %v327_v26 = vld [vmem:[%s2179_s4 + $0x70] sm:$0xff]  ;;  %v328_v27 = vld [vmem:[%s2179_s4 + $0x78] sm:$0xff]  ;;  %v1518_v28 = vpack.c.bf16 %v376_v22, %v375_v21 }
  0x22   : > { %1477 = vmatpush3.bf16.msra.mxu0 %v1476_v62  ;;  %v1516_v24 = vpack.c.bf16 %v358_v18, %v357_v15  ;;  %v359_v29 = vld [vmem:[%s2180_s5 + $0x70] sm:$0xff]  ;;  %v360_v30 = vld [vmem:[%s2180_s5 + $0x78] sm:$0xff]  ;;  %v1488_v31 = vpack.c.bf16 %v328_v27, %v327_v26  ;;  %v1991_v33 = vld [vmem:[%s1941_s19] sm:$0xff] }
  0x23   : > { %1509 = vmatpush3.bf16.msra.mxu1 %v1508_v63  ;;  %1479 = vmatprep.subr.bf16.mxu0 %v1478_v0  ;;  %v1520_v32 = vpack.c.bf16 %v360_v30, %v359_v29  ;;  %v1994_v34 = vld [vmem:[%s1941_s19 + $0x18] sm:$0xff]  ;;  %v2000_v35 = vld [vmem:[%s1941_s19 + $0x10] sm:$0xff]  ;;  %v2004_v36 = vld [vmem:[%s1941_s19 + $0x28] sm:$0xff] }
  0x24   : > { %1511 = vmatprep.subr.bf16.mxu1 %v1510_v4  ;;  %v2010_v37 = vld [vmem:[%s1941_s19 + $0x20] sm:$0xff]  ;;  %v2014_v38 = vld [vmem:[%s1941_s19 + $0x38] sm:$0xff]  ;;  %v2020_v39 = vld [vmem:[%s1941_s19 + $0x30] sm:$0xff] }
  0x25   : > { %v304_v14 = vld [vmem:[%s2176_s1] sm:$0x3]  ;;  %v307_v26 = vld [vmem:[%s2177_s2 + $0x10] sm:$0xff]  ;;  %v312_v29 = vld [vmem:[%s2178_s3 + $0x18] sm:$0xff] }
  0x26   : > { %1481 = vmatpush3.bf16.msra.mxu0 %v1480_v10  ;;  %v305_v15 = vld [vmem:[%s2177_s2] sm:$0xff]  ;;  %v311_v27 = vld [vmem:[%s2178_s3 + $0x10] sm:$0xff]  ;;  %v378_v30 = vld [vmem:[%s2181_s6 + $0x8] sm:$0xff] }
  0x27   : > { %1513 = vmatpush3.bf16.msra.mxu1 %v1512_v12  ;;  %1483 = vmatprep.subr.bf16.mxu0 %v1482_v13 }
  0x28   : > { %1515 = vmatprep.subr.bf16.mxu1 %v1514_v17  ;;  %v309_v17 = vld [vmem:[%s2178_s3] sm:$0xff] }
  0x2a   : > { %1485 = vmatpush3.bf16.msra.mxu0 %v1484_v23 }
  0x2b   : > { %1517 = vmatpush3.bf16.msra.mxu1 %v1516_v24  ;;  %1487 = vmatprep.subr.bf16.mxu0 %v1486_v25  ;;  %v306_v24 = vld [vmem:[%s2177_s2 + $0x8] sm:$0xff] }
  0x2c   : > { %1519 = vmatprep.subr.bf16.mxu1 %v1518_v28  ;;  %v310_v25 = vld [vmem:[%s2178_s3 + $0x8] sm:$0xff]  ;;  %v308_v28 = vld [vmem:[%s2177_s2 + $0x18] sm:$0xff] }
  0x2e   : > { %1489 = vmatpush3.bf16.msra.mxu0 %v1488_v31  ;;  %v380_v31 = vld [vmem:[%s2181_s6 + $0x18] sm:$0xff] }
  0x2f   : > { %1521 = vmatpush3.bf16.msra.mxu1 %v1520_v32  ;;  %1522 = vmatprep.subr.bf16.mxu0 %v1682_v40  ;;  %v377_v32 = vld [vmem:[%s2181_s6] sm:$0xff] }
  0x30   : > { %1528 = vmatprep.subr.bf16.mxu1 %v1682_v40 }
  0x31   : > { %458 = vmatmul.mubr.f32.vlgmr.msra.gmra.mrb[0].mxu0 %v1991_v33 }
  0x32   : > { %547 = vmatmul.mubr.f32.vlgmr.msra.gmra.mrb[0].mxu1 %v1991_v33  ;;  %462 = vmatprep.mubr.f32.mxu0 %v1994_v34 }
  0x33   : > { %551 = vmatprep.mubr.f32.mxu1 %v1994_v34 }
  0x35   : > { %463 = vmatmul.mubr.f32.gmra.mrb[2].mxu0 %v2000_v35 }
  0x36   : > { %552 = vmatmul.mubr.f32.gmra.mrb[2].mxu1 %v2000_v35  ;;  %467 = vmatprep.mubr.f32.mxu0 %v2004_v36 }
  0x37   : > { %556 = vmatprep.mubr.f32.mxu1 %v2004_v36 }
  0x39   : > { %468 = vmatmul.mubr.f32.gmra.mrb[4].mxu0 %v2010_v37 }
  0x3a   : > { %557 = vmatmul.mubr.f32.gmra.mrb[4].mxu1 %v2010_v37  ;;  %472 = vmatprep.mubr.f32.mxu0 %v2014_v38 }
  0x3b   : > { %561 = vmatprep.mubr.f32.mxu1 %v2014_v38 }
  0x3d   : > { %473 = vmatmul.mubr.f32.gmra.mrb[6].mxu0 %v2020_v39 }
  0x3e   : > { %562 = vmatmul.mubr.f32.gmra.mrb[6].mxu1 %v2020_v39  ;;  %1428 = vmatprep.mubr.msk.f32.mxu0 %vm1683_vm0, %v1684_v41 }
  0x3f   : > { %1439 = vmatprep.mubr.msk.f32.mxu1 %vm1683_vm0, %v1684_v41 }
 0x104   : > { %v1344_v42 = vpop.f32.mrb[0].mxu0 }
 0x105   : > { %v1345_v43 = vpop.f32.mrb[1].mxu0  ;;  %v1388_v44 = vpop.f32.mrb[0].mxu1 }
 0x106   : > { %v1346_v45 = vadd.f32 %v1345_v43, %v1344_v42  ;;  %v1389_v46 = vpop.f32.mrb[1].mxu1  ;;  %v379_v42 = vld [vmem:[%s2181_s6 + $0x10] sm:$0xff]  ;;  %v382_v43 = vld [vmem:[%s2182_s7 + $0x8] sm:$0xff] }
 0x107   : > { %v1390_v47 = vadd.f32 %v1389_v46, %v1388_v44  ;;  %v384_v44 = vld [vmem:[%s2182_s7 + $0x18] sm:$0xff] }
 0x108   : > { %v1347_v48 = vpop.f32.mrb[2].mxu0  ;;  %v478_v54 = vmul.f32 0.0625, %v1346_v45  ;;  %v1536_v45 = vpack.c.bf16 %v379_v42, %v377_v32  ;;  %v1538_v46 = vpack.c.bf16 %v384_v44, %v382_v43 }
 0x109   : > { %v1391_v49 = vpop.f32.mrb[2].mxu1  ;;  %v1348_v50 = vpop.f32.mrb[3].mxu0  ;;  %v567_v57 = vmul.f32 0.0625, %v1390_v47  ;;  %v381_v47 = vld [vmem:[%s2182_s7] sm:$0xff] }
 0x10a   : > { %v1349_v51 = vadd.f32 %v1348_v50, %v1347_v48  ;;  %v1392_v52 = vpop.f32.mrb[3].mxu1  ;;  %v383_v48 = vld [vmem:[%s2182_s7 + $0x10] sm:$0xff] }
 0x10b   : > { %v1393_v53 = vadd.f32 %v1392_v52, %v1391_v49  ;;  %v1540_v49 = vpack.c.bf16 %v383_v48, %v381_v47 }
 0x10c   : > { %v479_v55 = vmul.f32 0.0625, %v1349_v51  ;;  %v1350_v56 = vpop.f32.mrb[4].mxu0 }
 0x10d   : > { %v568_v58 = vmul.f32 0.0625, %v1393_v53  ;;  %v1351_v59 = vpop.f32.mrb[5].mxu0  ;;  %v1394_v60 = vpop.f32.mrb[4].mxu1 }
 0x10e   : > { %v1523_v61 = vpack.c.bf16 %v479_v55, %v478_v54  ;;  %v1352_v62 = vadd.f32 %v1351_v59, %v1350_v56  ;;  %v1395_v63 = vpop.f32.mrb[5].mxu1 }
 0x10f   : > { %v1529_v0 = vpack.c.bf16 %v568_v58, %v567_v57  ;;  %v1396_v1 = vadd.f32 %v1395_v63, %v1394_v60 }
 0x110   : > { %v1353_v2 = vpop.f32.mrb[6].mxu0  ;;  %1524 = vmatpush3.bf16.msra.mxu0 %v1523_v61  ;;  %v480_v8 = vmul.f32 0.0625, %v1352_v62 }
 0x111   : > { %v1397_v3 = vpop.f32.mrb[6].mxu1  ;;  %1530 = vmatpush3.bf16.msra.mxu1 %v1529_v0  ;;  %v1354_v4 = vpop.f32.mrb[7].mxu0  ;;  %1525 = vmatprep.subr.bf16.mxu0 %v1682_v40  ;;  %v569_v10 = vmul.f32 0.0625, %v1396_v1 }
 0x112   : > { %v1355_v5 = vadd.f32 %v1354_v4, %v1353_v2  ;;  %v1398_v6 = vpop.f32.mrb[7].mxu1  ;;  %1531 = vmatprep.subr.bf16.mxu1 %v1682_v40  ;;  %v1534_v40 = vpack.c.bf16 %v380_v31, %v378_v30 }
 0x113   : > { %v1399_v7 = vadd.f32 %v1398_v6, %v1397_v3 }
 0x114   : > { %v481_v9 = vmul.f32 0.0625, %v1355_v5 }
 0x115   : > { %v570_v11 = vmul.f32 0.0625, %v1399_v7 }
 0x116   : > { %v1526_v12 = vpack.c.bf16 %v481_v9, %v480_v8 }
 0x117   : > { %v1532_v13 = vpack.c.bf16 %v570_v11, %v569_v10 }
 0x118   : > { %1527 = vmatpush3.bf16.msra.mxu0 %v1526_v12 }
 0x119   : > { %1533 = vmatpush3.bf16.msra.mxu1 %v1532_v13 }
 0x11b   : > { %1429 = vmatmul.mubr.msk.f32.vlgmr.msra.gmra.mrb[8].mxu0 %vm571_vm1, %v304_v14 }
 0x11c   : > { %1440 = vmatmul.mubr.msk.f32.vlgmr.msra.gmra.mrb[8].mxu1 %vm571_vm1, %v304_v14  ;;  %1444 = vmatprep.mubr.msk.f32.mxu0 %vm717_vm2, %v305_v15 }
 0x11d   : > { %1452 = vmatprep.mubr.msk.f32.mxu1 %vm717_vm2, %v309_v17 }
 0x1ee   : > { %v641_v18 = vpop.f32.mrb[8].mxu0 }
 0x1ef   : > { %v645_v19 = vmax.f32 %v641_v18, 0.0  ;;  %v712_v20 = vpop.f32.mrb[8].mxu1  ;;  %v1430_v21 = vpop.f32.mrb[9].mxu0 }
 0x1f0   : > { %v716_v22 = vmax.f32 %v712_v20, 0.0  ;;  %v1441_v23 = vpop.f32.mrb[9].mxu1 }
 0x1f1   : > { %1442 = vmatprep.subr.msk.mxu0 %vm730_vm3, %v645_v19 }
 0x1f2   : > { %1443 = vmatpush3.msk.msra.mxu0 %vm730_vm3, %v645_v19  ;;  %1450 = vmatprep.subr.msk.mxu1 %vm730_vm3, %v716_v22 }
 0x1f3   : > { %1445 = vmatmul.mubr.msk.f32.vlgmr.msra.gmra.mrb[10].mxu0 %vm717_vm2, %v306_v24  ;;  %1451 = vmatpush3.msk.msra.mxu1 %vm730_vm3, %v716_v22 }
 0x1f4   : > { %1453 = vmatmul.mubr.msk.f32.vlgmr.msra.gmra.mrb[10].mxu1 %vm717_vm2, %v310_v25  ;;  %1447 = vmatprep.mubr.msk.f32.mxu0 %vm717_vm2, %v307_v26 }
 0x1f5   : > { %1455 = vmatprep.mubr.msk.f32.mxu1 %vm717_vm2, %v311_v27  ;;  %1535 = vmatprep.subr.bf16.mxu0 %v1534_v40 }
 0x1f6   : > { %1537 = vmatpush1.bf16.msra.mxu0 %v1536_v45  ;;  %1539 = vmatprep.subr.bf16.mxu1 %v1538_v46 }
 0x1f7   : > { %1448 = vmatmul.mubr.msk.f32.gmra.mrb[12].mxu0 %vm717_vm2, %v308_v28  ;;  %1541 = vmatpush1.bf16.msra.mxu1 %v1540_v49 }
 0x1f8   : > { %1456 = vmatmul.mubr.msk.f32.gmra.mrb[12].mxu1 %vm717_vm2, %v312_v29  ;;  %1044 = vmatprep.mubr.f32.mxu0 %v1684_v41 }
 0x1f9   : > { %1145 = vmatprep.mubr.f32.mxu1 %v1684_v41 }
 0x2c6   : > { %v1446_v50 = vpop.f32.mrb[10].mxu0 }
 0x2c7   : > { %v1285_v51 = vmul.f32 -1.442695, %v1446_v50  ;;  %v800_v52 = vpop.f32.mrb[11].mxu0  ;;  %v1454_v53 = vpop.f32.mrb[10].mxu1 }
 0x2c8   : > { %v1284_v54 = vmul.f32 -1.442695, %v800_v52  ;;  %v1294_v55 = vmul.f32 -1.442695, %v1454_v53  ;;  %v924_v56 = vpop.f32.mrb[11].mxu1 }
 0x2c9   : > { %1586 = vpow2.f32 %v1285_v51  ;;  %v1293_v57 = vmul.f32 -1.442695, %v924_v56 }
 0x2ca   : > { %1588 = vpow2.f32 %v1284_v54  ;;  %v1449_v58 = vpop.f32.mrb[12].mxu0 }
 0x2cb   : > { %1590 = vpow2.f32 %v1294_v55  ;;  %v810_v59 = vpop.f32.mrb[13].mxu0  ;;  %v1457_v60 = vpop.f32.mrb[12].mxu1  ;;  %v1287_v0 = vmul.f32 -1.442695, %v1449_v58 }
 0x2cc   : > { %1592 = vpow2.f32 %v1293_v57  ;;  %v1286_v61 = vmul.f32 -1.442695, %v810_v59  ;;  %v934_v62 = vpop.f32.mrb[13].mxu1  ;;  %v1296_v1 = vmul.f32 -1.442695, %v1457_v60 }
 0x2cd   : > { %v1295_v63 = vmul.f32 -1.442695, %v934_v62 }
 0x2ce   : > { %1594 = vpow2.f32 %v1286_v61 }
 0x2cf   : > { %1596 = vpow2.f32 %v1295_v63 }
 0x2d0   : > { %1598 = vpow2.f32 %v1287_v0 }
 0x2d1   : > { %1600 = vpow2.f32 %v1296_v1 }
 0x2d3   : > { %v1587_v2 = vpop.eup %1586 }
 0x2d4   : > { %v1589_v3 = vpop.eup %1588  ;;  %v832_v7 = vadd.f32 1.0, %v1587_v2 }
 0x2d5   : > { %v1591_v4 = vpop.eup %1590  ;;  %v831_v5 = vadd.f32 1.0, %v1589_v3 }
 0x2d6   : > { %v1593_v6 = vpop.eup %1592  ;;  %v956_v10 = vadd.f32 1.0, %v1591_v4 }
 0x2d7   : > { %1602 = vrcp.f32 %v831_v5  ;;  %v955_v8 = vadd.f32 1.0, %v1593_v6 }
 0x2d8   : > { %v1595_v9 = vpop.eup %1594 }
 0x2d9   : > { %1604 = vrcp.f32 %v955_v8  ;;  %v833_v11 = vadd.f32 1.0, %v1595_v9  ;;  %v1597_v12 = vpop.eup %1596 }
 0x2da   : > { %1606 = vrcp.f32 %v832_v7  ;;  %v957_v13 = vadd.f32 1.0, %v1597_v12  ;;  %v1599_v14 = vpop.eup %1598 }
 0x2db   : > { %1608 = vrcp.f32 %v956_v10  ;;  %v1601_v15 = vpop.eup %1600  ;;  %v834_v17 = vadd.f32 1.0, %v1599_v14 }
 0x2dc   : > { %1610 = vrcp.f32 %v833_v11  ;;  %v958_v19 = vadd.f32 1.0, %v1601_v15 }
 0x2dd   : > { %1612 = vrcp.f32 %v957_v13 }
 0x2de   : > { %1614 = vrcp.f32 %v834_v17 }
 0x2df   : > { %1616 = vrcp.f32 %v958_v19 }
 0x2e1   : > { %v1603_v18 = vpop.eup %1602 }
 0x2e2   : > { %1297 = vmatmul.mubr.msk.f32.vlgmr.msra.gmra.mrb[14].mxu0 %vm967_vm4, %v1603_v18 }
 0x2e3   : > { %v1605_v20 = vpop.eup %1604  ;;  %1050 = vmatprep.mubr.f32.mxu0 %v1684_v41 }
 0x2e4   : > { %1301 = vmatmul.mubr.msk.f32.vlgmr.msra.gmra.mrb[14].mxu1 %vm967_vm4, %v1605_v20  ;;  %v1607_v21 = vpop.eup %1606 }
 0x2e5   : > { %1151 = vmatprep.mubr.f32.mxu1 %v1684_v41  ;;  %v1609_v22 = vpop.eup %1608 }
 0x2e6   : > { %1298 = vmatmul.mubr.msk.f32.gmra.mrb[16].mxu0 %vm967_vm4, %v1607_v21  ;;  %v1611_v23 = vpop.eup %1610 }
 0x2e7   : > { %1056 = vmatprep.mubr.f32.mxu0 %v1684_v41  ;;  %v1613_v24 = vpop.eup %1612 }
 0x2e8   : > { %1302 = vmatmul.mubr.msk.f32.gmra.mrb[16].mxu1 %vm967_vm4, %v1609_v22  ;;  %v1615_v25 = vpop.eup %1614 }
 0x2e9   : > { %1157 = vmatprep.mubr.f32.mxu1 %v1684_v41  ;;  %v1617_v26 = vpop.eup %1616 }
 0x2ea   : > { %1299 = vmatmul.mubr.msk.f32.gmra.mrb[18].mxu0 %vm967_vm4, %v1611_v23 }
 0x2eb   : > { %1062 = vmatprep.mubr.f32.mxu0 %v1684_v41 }
 0x2ec   : > { %1303 = vmatmul.mubr.msk.f32.gmra.mrb[18].mxu1 %vm967_vm4, %v1613_v24 }
 0x2ed   : > { %1163 = vmatprep.mubr.f32.mxu1 %v1684_v41 }
 0x2ee   : > { %1300 = vmatmul.mubr.msk.f32.gmra.mrb[20].mxu0 %vm967_vm4, %v1615_v25 }
 0x2f0   : > { %1304 = vmatmul.mubr.msk.f32.gmra.mrb[20].mxu1 %vm967_vm4, %v1617_v26 }
 0x3b5   : > { %v1046_v27 = vpop.f32.mrb[14].mxu0 }
 0x3b6   : > { %v1170_v28 = vmul.f32 %v1046_v27, %v1991_v33  ;;  %v1048_v29 = vpop.f32.mrb[15].mxu0 }
 0x3b7   : > { %v1171_v30 = vmul.f32 %v1048_v29, %v1959_v16  ;;  %v1147_v31 = vpop.f32.mrb[14].mxu1 }
 0x3b8   : > { %v1178_v32 = vmul.f32 %v1170_v28, %v1147_v31  ;;  %v1149_v40 = vpop.f32.mrb[15].mxu1 }
 0x3b9   : > { %v1052_v42 = vpop.f32.mrb[16].mxu0  ;;  %v1179_v43 = vmul.f32 %v1171_v30, %v1149_v40 }
 0x3ba   : > { %1186 = vst [vmem:[%s2107_s21] sm:$0xff] %v1178_v32  ;;  %v1172_v41 = vmul.f32 %v1052_v42, %v2000_v35  ;;  %v1054_v44 = vpop.f32.mrb[17].mxu0 }
 0x3bb   : > { %1187 = vst [vmem:[%s2107_s21 + $0x8] sm:$0xff] %v1179_v43  ;;  %v1173_v33 = vmul.f32 %v1054_v44, %v1994_v34  ;;  %v1153_v16 = vpop.f32.mrb[16].mxu1 }
 0x3bc   : > { %v1180_v45 = vmul.f32 %v1172_v41, %v1153_v16  ;;  %v1155_v46 = vpop.f32.mrb[17].mxu1 }
 0x3bd   : > { %v1181_v47 = vmul.f32 %v1173_v33, %v1155_v46  ;;  %v1058_v48 = vpop.f32.mrb[18].mxu0 }
 0x3be   : > { %1188 = vst [vmem:[%s2107_s21 + $0x10] sm:$0xff] %v1180_v45  ;;  %v1174_v49 = vmul.f32 %v1058_v48, %v2010_v37  ;;  %v1060_v50 = vpop.f32.mrb[19].mxu0 }
 0x3bf   : > { %1189 = vst [vmem:[%s2107_s21 + $0x18] sm:$0xff] %v1181_v47  ;;  %v1175_v35 = vmul.f32 %v1060_v50, %v2004_v36  ;;  %v1159_v51 = vpop.f32.mrb[18].mxu1 }
 0x3c0   : > { %v1182_v52 = vmul.f32 %v1174_v49, %v1159_v51  ;;  %v1161_v53 = vpop.f32.mrb[19].mxu1 }
 0x3c1   : > { %v1064_v34 = vpop.f32.mrb[20].mxu0  ;;  %v1183_v54 = vmul.f32 %v1175_v35, %v1161_v53 }
 0x3c2   : > { %1190 = vst [vmem:[%s2107_s21 + $0x20] sm:$0xff] %v1182_v52  ;;  %v1176_v55 = vmul.f32 %v1064_v34, %v2020_v39  ;;  %v1066_v56 = vpop.f32.mrb[21].mxu0 }
 0x3c3   : > { %1191 = vst [vmem:[%s2107_s21 + $0x28] sm:$0xff] %v1183_v54  ;;  %v1177_v37 = vmul.f32 %v1066_v56, %v2014_v38  ;;  %v1165_v57 = vpop.f32.mrb[20].mxu1 }
 0x3c4   : > { %v1184_v36 = vmul.f32 %v1176_v55, %v1165_v57  ;;  %v1167_v58 = vpop.f32.mrb[21].mxu1 }
 0x3c5   : > { %v1185_v59 = vmul.f32 %v1177_v37, %v1167_v58 }
 0x3c6   : > { %1192 = vst [vmem:[%s2107_s21 + $0x30] sm:$0xff] %v1184_v36 }
 0x3c7   : > { %1193 = vst [vmem:[%s2107_s21 + $0x38] sm:$0xff] %v1185_v59 }
 0x3c8   : > { %1631 = shalt.err (!%p1628_p3)
}
 0x3c9   : > { %s1632_s17 = scalar_lea.hbm %s2126_s25, 1024  ;;  %s1636_s21 = scalar_lea.hbm %s2183_s8, 2048 }
 0x3ca   : > { %p1633_p4 = scmp.ne.s32.totalorder %s2126_s25, %s1632_s17  ;;  %p1637_p9 = scmp.lt.u32.totalorder %s2126_s25, %s2183_s8 }
 0x3cb   : > { %p1638_p10 = scmp.lt.u32.totalorder %s1636_s21, %s1632_s17  ;;  %p1640_p12 = scmp.lt.u32.totalorder %s1632_s17, %s2126_s25 }
 0x3cc   : > { %p1634_p7 = pnand %p1633_p4, %p1771_p5 }
 0x3cd   : > { %p1639_p11 = por %p1638_p10, %p1637_p9 }
 0x3ce   : > { %p1635_p8 = pneg %p1634_p7 }
 0x3cf   : > { %p1641_p13 = por %p1640_p12, %p1639_p11 }
 0x3d1   : > { %p1642_p0 = pnand %p1641_p13, %p1635_p8 }
 0x3d3   : > { %1645 = shalt.err (!%p1642_p0)
}
 0x3d4   : > { %s1686_s23 = smov 256   ;;  %s1687_s13 = smov 16  }
 0x3d5   : > { %1542 = dma.vmem_to_hbm [thread:$0]  (%p1771_p5), %s2128_s24, 1024, %s2126_s25, %s2134_s9, %s1686_s23, %s1686_s23, %s1687_s13  }
 0x3d6 PF: > { %p1548_p1 = scmp.ge.s32.totalorder %s1680_s30, 2  ;;  %s1223_s26 = sand.u32 1, %s1668_s27  }
 0x3d7   : > { %s1224_s10 = scalar_lea.sflag [#allocation3], %s1223_s26 }
 0x3d8   : > { %p1545_p2 = pnand %p1548_p1, %p1775_p6 }
 0x3da   : > { %1663 = dma.done.wait (!%p1545_p2), %s1224_s10, 1024  }
 0x3db   : > { %1665 = vsyncadd (!%p1545_p2), %s1224_s10, 4294966272  ;;  %p18_p3 = scmp.ge.s32.totalorder %s1758_s11, 4   ;;  %s2186_s27 = smov %s1672_s28 }
 0x3dc   : > { %s2187_s28 = smov %s1676_s29  ;;  %s2188_s29 = smov %s1769_s14 }
 0x3dd   : > { %s2189_s30 = smov %s1758_s11  ;;  %20 = sbr.rel (!%p18_p3) target bundleno = 3 (0x3), region = 87 }
 0x3e4   :  { %1229 = vsyncpa [#allocation3], 1 }
 0x3e5   :  { %1231 = vsyncpa [#allocation3 + $0x1], 1 }

</bundles_post_ra>
